<compile_context>
chip_gen: v6e
topology: v6e:2x2x1
jax: 0.10.0
libtpu: 0.0.40
codegen_flags: <defaults>
</compile_context>

<pallas_src>
import functools

import jax
import jax.numpy as jnp
from jax.experimental import pallas as pl
from jax.experimental.pallas import tpu as pltpu


TM_MAX = 256   # row-tile cap (sublane dim), multiple of 8
TN_MAX = 256   # col-tile cap (lane dim), multiple of 128 -> feeds 256-wide MXU


def _round_up(x, m):
    return (x + m - 1) // m * m


def _pad2d(a, rows, cols):
    if a.shape == (rows, cols):
        return a
    return jnp.pad(a, ((0, rows - a.shape[0]), (0, cols - a.shape[1])))


def _row_tile(m):
    """(tile, padded) for the sublane (row) dimension."""
    if m <= TM_MAX:
        t = _round_up(m, 8)
        return t, t
    return TM_MAX, _round_up(m, TM_MAX)


def _col_tile(n):
    """(tile, padded) for the lane (col) dimension. Full-dim blocks are allowed
    even when n is not a multiple of 128, so small widths need no padding."""
    if n <= TN_MAX:
        return n, n
    return TN_MAX, _round_up(n, TN_MAX)


# --------------------------------------------------------------------------------------
# Fused [LayerNorm] -> matmul(bf16, f32 acc) -> +bias -> [QuickGELU] -> [+residual]
# --------------------------------------------------------------------------------------
def _fused_linear_kernel(*refs, ln, act, res):
    it = iter(refs)
    x_ref = next(it)
    w_ref = next(it)
    b_ref = next(it)
    g_ref = next(it) if ln else None
    beta_ref = next(it) if ln else None
    r_ref = next(it) if res else None
    o_ref = next(it)
    xn_ref = next(it) if ln else None        # VMEM scratch: normalized bf16 x-tile

    if ln:
        # LayerNorm once per row-tile; cached and reused across all N-tiles (j is
        # the innermost grid axis, marked "arbitrary", so j==0 runs first per i).
        @pl.when(pl.program_id(1) == 0)
        def _():
            x = x_ref[...].astype(jnp.float32)
            mean = jnp.mean(x, axis=-1, keepdims=True)
            var = jnp.mean((x - mean) ** 2, axis=-1, keepdims=True)
            x = (x - mean) * jax.lax.rsqrt(var + 1e-5)
            xn_ref[...] = (x * g_ref[...] + beta_ref[...]).astype(jnp.bfloat16)
        xb = xn_ref[...]
    else:
        xb = x_ref[...].astype(jnp.bfloat16)

    y = jnp.dot(xb, w_ref[...], preferred_element_type=jnp.float32)
    y = y + b_ref[...]
    if act == "quick_gelu":
        # CLIP QuickGELU: x * sigmoid(1.702 * x)  (f32 on the VPU/EUP)
        y = y * jax.nn.sigmoid(1.702 * y)
    if res:
        y = y + r_ref[...].astype(jnp.float32)
    o_ref[...] = y.astype(o_ref.dtype)


def fused_linear(x, w, b=None, *, ln_g=None, ln_b=None, residual=None,
                 activation="none", out_dtype=jnp.bfloat16):
    """y = [residual +] act( LN?(x) @ W + b ), tiled over (M/tm, N/tn)."""
    M, K = x.shape
    N = w.shape[1]
    tm, Mp = _row_tile(M)
    tn, Np = _col_tile(N)

    x_p = _pad2d(x, Mp, K)
    w_p = _pad2d(w.astype(jnp.bfloat16), K, Np)
    if b is None:
        b = jnp.zeros((N,), jnp.float32)
    b_p = _pad2d(b.astype(jnp.float32).reshape(1, -1), 1, Np)

    args = [x_p, w_p, b_p]
    in_specs = [
        pl.BlockSpec((tm, K), lambda i, j: (i, 0)),      # x tile reused across j
        pl.BlockSpec((K, tn), lambda i, j: (0, j)),
        pl.BlockSpec((1, tn), lambda i, j: (0, j)),
    ]
    ln = ln_g is not None
    if ln:
        args += [ln_g.astype(jnp.float32).reshape(1, -1),
                 ln_b.astype(jnp.float32).reshape(1, -1)]
        in_specs += [pl.BlockSpec((1, K), lambda i, j: (0, 0)),
                     pl.BlockSpec((1, K), lambda i, j: (0, 0))]
    res = residual is not None
    if res:
        args.append(_pad2d(residual, Mp, Np))
        in_specs.append(pl.BlockSpec((tm, tn), lambda i, j: (i, j)))

    kernel = functools.partial(_fused_linear_kernel, ln=ln, act=activation, res=res)
    out = pl.pallas_call(
        kernel,
        grid=(Mp // tm, Np // tn),
        out_shape=jax.ShapeDtypeStruct((Mp, Np), out_dtype),
        in_specs=in_specs,
        out_specs=pl.BlockSpec((tm, tn), lambda i, j: (i, j)),
        scratch_shapes=[pltpu.VMEM((tm, K), jnp.bfloat16)] if ln else [],
        # i ("parallel") shards across TensorCores; j stays in-order per i so the
        # LN scratch caching under pl.when(j == 0) is always valid.
        compiler_params=pltpu.CompilerParams(
            dimension_semantics=("parallel", "arbitrary")),
    )(*args)
    if (Mp, Np) != (M, N):
        out = out[:M, :N]
    return out


# --------------------------------------------------------------------------------------
# ln_pre fused with the positional-embedding add (one memory-bound pass, grid over B)
# --------------------------------------------------------------------------------------
def _ln_posadd_kernel(x_ref, pos_ref, g_ref, b_ref, o_ref):
    x = x_ref[0].astype(jnp.float32) + pos_ref[...].astype(jnp.float32)
    mean = jnp.mean(x, axis=-1, keepdims=True)
    var = jnp.mean((x - mean) ** 2, axis=-1, keepdims=True)
    y = (x - mean) * jax.lax.rsqrt(var + 1e-5)
    o_ref[0] = (y * g_ref[...] + b_ref[...]).astype(o_ref.dtype)


def layernorm_posadd(x, pos, g, b):
    B, T, W = x.shape
    return pl.pallas_call(
        _ln_posadd_kernel,
        grid=(B,),
        out_shape=jax.ShapeDtypeStruct((B, T, W), jnp.bfloat16),
        in_specs=[pl.BlockSpec((1, T, W), lambda bb: (bb, 0, 0)),
                  pl.BlockSpec((T, W), lambda bb: (0, 0)),
                  pl.BlockSpec((1, W), lambda bb: (0, 0)),
                  pl.BlockSpec((1, W), lambda bb: (0, 0))],
        out_specs=pl.BlockSpec((1, T, W), lambda bb: (bb, 0, 0)),
        compiler_params=pltpu.CompilerParams(dimension_semantics=("parallel",)),
    )(x, pos, g.astype(jnp.float32).reshape(1, -1),
      b.astype(jnp.float32).reshape(1, -1))


# --------------------------------------------------------------------------------------
# Multi-head attention: grid over (batch, head); head-major qkv layout; in-kernel mask
# --------------------------------------------------------------------------------------
def _mha_kernel(q_ref, k_ref, v_ref, o_ref, *, causal, scale):
    q = q_ref[0].astype(jnp.bfloat16)                        # (T, Dh)
    k = k_ref[0].astype(jnp.bfloat16)
    v = v_ref[0].astype(jnp.bfloat16)
    s = jax.lax.dot_general(q, k, (((1,), (1,)), ((), ())),
                            preferred_element_type=jnp.float32) * scale
    if causal:
        T = s.shape[0]
        row = jax.lax.broadcasted_iota(jnp.int32, (T, T), 0)
        col = jax.lax.broadcasted_iota(jnp.int32, (T, T), 1)
        s = s + jnp.where(col > row, jnp.float32(-1e9), jnp.float32(0.0))
    s = s - jnp.max(s, axis=-1, keepdims=True)
    p = jnp.exp(s)
    p = p * pl.reciprocal(jnp.sum(p, axis=-1, keepdims=True), approx=True)
    o = jnp.dot(p.astype(jnp.bfloat16), v, preferred_element_type=jnp.float32)
    o_ref[0] = o.astype(o_ref.dtype)


def mha(qkv, n_heads, causal):
    # qkv: (B, T, 3W) fused projection output (bf16); returns (B, T, W) merged heads.
    B, T, W3 = qkv.shape
    W = W3 // 3
    H = n_heads
    Dh = W // H
    scale = 1.0 / float(Dh) ** 0.5
    # Head-major relayout (wrapper-side plumbing): (3*B*H, T, Dh) so each (b, h)
    # grid point DMAs a contiguous, full-dim-aligned Q/K/V tile.
    qkv_h = (qkv.reshape(B, T, 3, H, Dh)
                .transpose(2, 0, 3, 1, 4)
                .reshape(3 * B * H, T, Dh))
    BH = B * H
    kernel = functools.partial(_mha_kernel, causal=causal, scale=scale)
    out = pl.pallas_call(
        kernel,
        grid=(B, H),
        out_shape=jax.ShapeDtypeStruct((BH, T, Dh), jnp.bfloat16),
        in_specs=[
            pl.BlockSpec((1, T, Dh), lambda b, h, H=H: (b * H + h, 0, 0)),
            pl.BlockSpec((1, T, Dh), lambda b, h, H=H, BH=BH: (BH + b * H + h, 0, 0)),
            pl.BlockSpec((1, T, Dh), lambda b, h, H=H, BH=BH: (2 * BH + b * H + h, 0, 0)),
        ],
        out_specs=pl.BlockSpec((1, T, Dh), lambda b, h, H=H: (b * H + h, 0, 0)),
        compiler_params=pltpu.CompilerParams(
            dimension_semantics=("parallel", "parallel")),
    )(qkv_h, qkv_h, qkv_h)
    return out.reshape(B, H, T, Dh).transpose(0, 2, 1, 3).reshape(B, T, W)


# --------------------------------------------------------------------------------------
# L2-normalize (one tiny pass per tower) + cosine logits with exp(logit_scale) in SMEM
# --------------------------------------------------------------------------------------
def _l2norm_kernel(x_ref, o_ref):
    x = x_ref[...].astype(jnp.float32)
    inv = jax.lax.rsqrt(jnp.sum(x * x, axis=-1, keepdims=True) + 1e-12)
    o_ref[...] = (x * inv).astype(o_ref.dtype)


def l2_normalize(x):
    M, D = x.shape
    tm, Mp = _row_tile(M)
    out = pl.pallas_call(
        _l2norm_kernel,
        grid=(Mp // tm,),
        out_shape=jax.ShapeDtypeStruct((Mp, D), jnp.bfloat16),
        in_specs=[pl.BlockSpec((tm, D), lambda i: (i, 0))],
        out_specs=pl.BlockSpec((tm, D), lambda i: (i, 0)),
        compiler_params=pltpu.CompilerParams(dimension_semantics=("parallel",)),
    )(_pad2d(x, Mp, D))
    return out[:M] if Mp != M else out


def _clip_logits_kernel(scale_ref, img_ref, txt_ref, o_ref):
    sim = jnp.dot(img_ref[...], txt_ref[...], preferred_element_type=jnp.float32)
    o_ref[...] = (scale_ref[0] * sim).astype(o_ref.dtype)


def clip_logits(img_feats, txt_feats, logit_scale):
    # Normalize once per tower (not per output tile); pre-transpose text features so
    # the kernel is a plain (tm, D) @ (D, tn) MXU dot with no in-kernel transpose.
    img_n = l2_normalize(img_feats)          # (M, D) bf16
    txt_n_t = l2_normalize(txt_feats).T      # (D, N) bf16 (layout glue in XLA)
    M, D = img_n.shape
    N = txt_n_t.shape[1]
    tm, Mp = _row_tile(M)
    tn, Np = _col_tile(N)
    scale = jnp.exp(logit_scale).reshape(1).astype(jnp.float32)
    out = pl.pallas_call(
        _clip_logits_kernel,
        grid=(Mp // tm, Np // tn),
        out_shape=jax.ShapeDtypeStruct((Mp, Np), jnp.float32),
        in_specs=[pl.BlockSpec(memory_space=pltpu.MemorySpace.SMEM),
                  pl.BlockSpec((tm, D), lambda i, j: (i, 0)),
                  pl.BlockSpec((D, tn), lambda i, j: (0, j))],
        out_specs=pl.BlockSpec((tm, tn), lambda i, j: (i, j)),
        compiler_params=pltpu.CompilerParams(
            dimension_semantics=("parallel", "parallel")),
    )(scale, _pad2d(img_n, Mp, D), _pad2d(txt_n_t, D, Np))
    if (Mp, Np) != (M, N):
        out = out[:M, :N]
    return out


# --------------------------------------------------------------------------------------
# Transformer building blocks (reshape/concat/gather glue in JAX, compute in Pallas)
# --------------------------------------------------------------------------------------
def transformer_block(x, p, n_heads, causal):
    B, T, W = x.shape
    x2 = x.reshape(B * T, W)
    # pre-LN fused into the qkv projection (LN cached in VMEM across N-tiles)
    qkv = fused_linear(x2, p["qkv_w"], p["qkv_b"], ln_g=p["ln1_g"], ln_b=p["ln1_b"])
    attn = mha(qkv.reshape(B, T, 3 * W), n_heads, causal)               # (B, T, W)
    # output projection with residual add fused
    x2 = fused_linear(attn.reshape(B * T, W), p["out_w"], p["out_b"], residual=x2)
    # pre-LN + fc + bias + QuickGELU fused
    h = fused_linear(x2, p["fc_w"], p["fc_b"], ln_g=p["ln2_g"], ln_b=p["ln2_b"],
                     activation="quick_gelu")
    # MLP projection with residual add fused
    x2 = fused_linear(h, p["proj_w"], p["proj_b"], residual=x2)
    return x2.reshape(B, T, W)


def encode_image(x, vp, cfg):
    # x: (B, 3, H, W) NCHW, PyTorch convention
    B = x.shape[0]
    p, W = cfg["patch"], cfg["vision_width"]
    gh = gw = cfg["image_size"] // p
    n_patches = gh * gw

    # im2col (channel-major patch flatten, matches PyTorch conv weight flatten order)
    patches = x.reshape(B, 3, gh, p, gw, p).transpose(0, 2, 4, 1, 3, 5)
    patches = patches.reshape(B * n_patches, 3 * p * p)
    tokens = fused_linear(patches, vp["conv_w"]).reshape(B, n_patches, W)   # bf16

    cls = jnp.broadcast_to(vp["class_emb"].reshape(1, 1, W), (B, 1, W))
    xseq = jnp.concatenate([cls.astype(tokens.dtype), tokens], axis=1)      # (B,T,W)

    # ln_pre fused with the positional-embedding add
    xseq = layernorm_posadd(xseq, vp["pos_emb"], vp["ln_pre_g"], vp["ln_pre_b"])

    for blk in vp["blocks"]:
        xseq = transformer_block(xseq, blk, cfg["vision_heads"], causal=False)

    cls_tok = xseq[:, 0, :]                                        # (B, W)
    # ln_post fused into the visual projection matmul
    return fused_linear(cls_tok, vp["proj"],
                        ln_g=vp["ln_post_g"], ln_b=vp["ln_post_b"])


def encode_text(text, tp, cfg):
    # text: (C, T) int32 token ids
    C, T = text.shape

    x = jnp.take(tp["tok_emb"], text, axis=0)                      # embedding gather
    x = (x + tp["pos_emb"][None, :, :]).astype(jnp.bfloat16)       # bf16 activations

    for blk in tp["blocks"]:
        x = transformer_block(x, blk, cfg["text_heads"], causal=True)

    # CLIP: EOT token has the maximum id -> argmax lookup (true for real BPE and here)
    eot = jnp.argmax(text, axis=-1)
    x_eot = x[jnp.arange(C), eot]                                  # (C, W) gather
    # ln_final is per-token so it commutes with the EOT gather: fuse into projection.
    return fused_linear(x_eot, tp["text_proj"],
                        ln_g=tp["ln_final_g"], ln_b=tp["ln_final_b"])


def clip_finetune_forward(image, text, params, cfg):
    img_feats = encode_image(image, params["visual"], cfg)
    txt_feats = encode_text(text, params["text"], cfg)
    # forward returns logits_per_image only (the module discards logits_per_text)
    return clip_logits(img_feats, txt_feats, params["logit_scale"])


# --------------------------------------------------------------------------------------
# Deterministic synthetic parameter init (matmul weights stored bf16 for the MXU).
# --------------------------------------------------------------------------------------
def init_block(key, width):
    ks = jax.random.split(key, 4)
    s = 0.02
    return {
        "ln1_g": jnp.ones((width,), jnp.float32),
        "ln1_b": jnp.zeros((width,), jnp.float32),
        "qkv_w": (s * jax.random.normal(ks[0], (width, 3 * width))).astype(jnp.bfloat16),
        "qkv_b": jnp.zeros((3 * width,), jnp.float32),
        "out_w": (s * jax.random.normal(ks[1], (width, width))).astype(jnp.bfloat16),
        "out_b": jnp.zeros((width,), jnp.float32),
        "ln2_g": jnp.ones((width,), jnp.float32),
        "ln2_b": jnp.zeros((width,), jnp.float32),
        "fc_w": (s * jax.random.normal(ks[2], (width, 4 * width))).astype(jnp.bfloat16),
        "fc_b": jnp.zeros((4 * width,), jnp.float32),
        "proj_w": (s * jax.random.normal(ks[3], (4 * width, width))).astype(jnp.bfloat16),
        "proj_b": jnp.zeros((width,), jnp.float32),
    }


def init_params(key, cfg):
    kv, kt, kc, kp, kpe, kproj, kte, ktp, ktpe = jax.random.split(key, 9)
    s = 0.02
    p = cfg["patch"]
    Wv, Wt, D = cfg["vision_width"], cfg["text_width"], cfg["embed_dim"]
    n_tok = (cfg["image_size"] // p) ** 2 + 1

    visual = {
        "conv_w": (s * jax.random.normal(kc, (3 * p * p, Wv))).astype(jnp.bfloat16),
        "class_emb": s * jax.random.normal(kp, (Wv,), jnp.float32),
        "pos_emb": s * jax.random.normal(kpe, (n_tok, Wv), jnp.float32),
        "ln_pre_g": jnp.ones((Wv,), jnp.float32),
        "ln_pre_b": jnp.zeros((Wv,), jnp.float32),
        "ln_post_g": jnp.ones((Wv,), jnp.float32),
        "ln_post_b": jnp.zeros((Wv,), jnp.float32),
        "proj": (s * jax.random.normal(kproj, (Wv, D))).astype(jnp.bfloat16),
        "blocks": [init_block(k, Wv)
                   for k in jax.random.split(kv, cfg["vision_layers"])],
    }
    textp = {
        "tok_emb": s * jax.random.normal(kte, (cfg["vocab"], Wt), jnp.float32),
        "pos_emb": s * jax.random.normal(ktpe, (cfg["context_len"], Wt), jnp.float32),
        "ln_final_g": jnp.ones((Wt,), jnp.float32),
        "ln_final_b": jnp.zeros((Wt,), jnp.float32),
        "text_proj": (s * jax.random.normal(ktp, (Wt, D))).astype(jnp.bfloat16),
        "blocks": [init_block(k, Wt)
                   for k in jax.random.split(kt, cfg["text_layers"])],
    }
    return {
        "visual": visual,
        "text": textp,
        # CLIP init: logit_scale = ln(1 / 0.07)
        "logit_scale": jnp.array(jnp.log(1.0 / 0.07), jnp.float32),
    }


# --------------------------------------------------------------------------------------
if __name__ == "__main__":
    cfg = dict(
        image_size=32,
        patch=16,
        vision_width=32,
        vision_heads=2,
        vision_layers=2,
        text_width=32,
        text_heads=2,
        text_layers=2,
        embed_dim=16,
        vocab=64,
        context_len=8,
        num_class=8,
        batch=2,
    )

    key = jax.random.PRNGKey(0)
    k_img, k_txt, k_par = jax.random.split(key, 3)

    # image: (B, 3, H, W) NCHW like the PyTorch module expects
    image = jax.random.normal(
        k_img, (cfg["batch"], 3, cfg["image_size"], cfg["image_size"]), jnp.float32
    )

    # synthetic tokenized class-name prompts: (num_class, context_len) with an EOT
    # token (= vocab-1, the maximum id) at the end, matching CLIP's argmax lookup.
    text = jax.random.randint(
        k_txt, (cfg["num_class"], cfg["context_len"]), 1, cfg["vocab"] - 1, jnp.int32
    )
    text = text.at[:, -1].set(cfg["vocab"] - 1)

    params = init_params(k_par, cfg)

    logits_per_image = clip_finetune_forward(image, text, params, cfg)
    logits_per_image = jax.block_until_ready(logits_per_image)

    assert logits_per_image.shape == (cfg["batch"], cfg["num_class"])
    assert bool(jnp.all(jnp.isfinite(logits_per_image)))
    print("KERNEL_OK")
</pallas_src>

<mosaic_0001>
module attributes {stable_mosaic.version = 11 : i64} {
  func.func @_fused_linear_kernel(%arg0: i32, %arg1: i32, %arg2: memref<8x768xf32, #tpu.memory_space<vmem>>, %arg3: memref<768x32xbf16, #tpu.memory_space<vmem>>, %arg4: memref<1x32xf32, #tpu.memory_space<vmem>>, %arg5: memref<8x32xbf16, #tpu.memory_space<vmem>>) attributes {dimension_semantics = [#tpu.dimension_semantics<parallel>, #tpu.dimension_semantics<arbitrary>], iteration_bounds = array<i64: 1, 1>, scalar_prefetch = 0 : i64, scratch_operands = 0 : i64, tpu.core_type = #tpu.core_type<tc>, window_params = [{transform_indices = @transform_0, window_bounds = array<i64: 8, 768>}, {transform_indices = @transform_1, window_bounds = array<i64: 768, 32>}, {transform_indices = @transform_2, window_bounds = array<i64: 1, 32>}, {transform_indices = @transform_3, window_bounds = array<i64: 8, 32>}]} {
    %c0 = arith.constant 0 : index
    %c0_0 = arith.constant 0 : index
    %0 = vector.load %arg2[%c0, %c0_0] : memref<8x768xf32, #tpu.memory_space<vmem>>, vector<8x768xf32>
    %1 = arith.truncf %0 : vector<8x768xf32> to vector<8x768xbf16>
    %c0_1 = arith.constant 0 : index
    %c0_2 = arith.constant 0 : index
    %2 = vector.load %arg3[%c0_1, %c0_2] : memref<768x32xbf16, #tpu.memory_space<vmem>>, vector<768x32xbf16>
    %cst = arith.constant dense<0.000000e+00> : vector<8x32xf32>
    %3 = tpu.matmul %1, %2, %cst {dimension_numbers = #tpu.dot_dimension_numbers<[1], [0], [0], [1], [0, 0, 1, 1], [], []>} : vector<8x768xbf16>, vector<768x32xbf16>, vector<8x32xf32> -> vector<8x32xf32>
    %c0_3 = arith.constant 0 : index
    %c0_4 = arith.constant 0 : index
    %4 = vector.load %arg4[%c0_3, %c0_4] : memref<1x32xf32, #tpu.memory_space<vmem>>, vector<1x32xf32>
    %5 = vector.broadcast %4 : vector<1x32xf32> to vector<8x32xf32>
    %6 = arith.addf %3, %5 : vector<8x32xf32>
    %7 = arith.truncf %6 : vector<8x32xf32> to vector<8x32xbf16>
    %c0_5 = arith.constant 0 : index
    %c0_6 = arith.constant 0 : index
    %8 = vector.load %arg5[%c0_5, %c0_6] : memref<8x32xbf16, #tpu.memory_space<vmem>>, vector<8x32xbf16>
    tpu.vector_store %arg5[%c0_5, %c0_6], %7 {strides = array<i32>} : memref<8x32xbf16, #tpu.memory_space<vmem>>, vector<8x32xbf16>,
    return
  }
  func.func @transform_0(%arg0: i32, %arg1: i32) -> (i32, i32) {
    %c0_i32 = arith.constant 0 : i32
    %c0_i32_0 = arith.constant 0 : i32
    return %arg0, %c0_i32 : i32, i32
  }
  func.func @transform_1(%arg0: i32, %arg1: i32) -> (i32, i32) {
    %c0_i32 = arith.constant 0 : i32
    %c0_i32_0 = arith.constant 0 : i32
    return %c0_i32, %arg1 : i32, i32
  }
  func.func @transform_2(%arg0: i32, %arg1: i32) -> (i32, i32) {
    %c0_i32 = arith.constant 0 : i32
    %c0_i32_0 = arith.constant 0 : i32
    return %c0_i32, %arg1 : i32, i32
  }
  func.func @transform_3(%arg0: i32, %arg1: i32) -> (i32, i32) {
    %c0_i32 = arith.constant 0 : i32
    return %arg0, %arg1 : i32, i32
  }
}

</mosaic_0001>

<bundles_post_ra>
// kernel: tpu_custom_call.1
= control target key start
LH: loop header
LB: loop body
LE: loop exit
PB: predicated region body
PF: predicated region fallthrough
CT: control target
= control target key end

     0   :  { %s931_s0 = inlined_call_operand.vmem [shape: f32[8,768], index: 0, kind: input, shape index: {}]   ;;  %s932_s1 = inlined_call_operand.vmem [shape: bf16[768,32], index: 1, kind: input, shape index: {}]   ;;  %s933_s2 = inlined_call_operand.vmem [shape: f32[1,32], index: 2, kind: input, shape index: {}]   ;;  %s934_s3 = inlined_call_operand.hbm [shape: bf16[8,32], index: 3, kind: output, shape index: {}]  }
   0x1   :  { %v672_v0 = vld [vmem:[%s932_s1 + $0x78] sm:$0xff]   ;;  %v676_v4 = vld [vmem:[%s932_s1 + $0x70] sm:$0xff]   ;;  %v680_v8 = vld [vmem:[%s932_s1 + $0x68] sm:$0xff]  }
   0x2   :  { %v673_v1 = vld [vmem:[%s932_s1 + $0x38] sm:$0xff]   ;;  %605 = vmatprep.subr.bf16.mxu0 %v672_v0  ;;  %v677_v5 = vld [vmem:[%s932_s1 + $0x30] sm:$0xff]   ;;  %v681_v9 = vld [vmem:[%s932_s1 + $0x28] sm:$0xff]  }
   0x3   :  { %v674_v2 = vld [vmem:[%s932_s1 + $0xf8] sm:$0xff]   ;;  %606 = vmatpush3.bf16.msra.mxu0 %v673_v1  ;;  %v678_v6 = vld [vmem:[%s932_s1 + $0xf0] sm:$0xff]   ;;  %v682_v10 = vld [vmem:[%s932_s1 + $0xe8] sm:$0xff]  }
   0x4   :  { %v675_v3 = vld [vmem:[%s932_s1 + $0xb8] sm:$0xff]   ;;  %627 = vmatprep.subr.bf16.mxu1 %v674_v2  ;;  %607 = vmatprep.subr.bf16.mxu0 %v676_v4  ;;  %v679_v7 = vld [vmem:[%s932_s1 + $0xb0] sm:$0xff]   ;;  %v683_v11 = vld [vmem:[%s932_s1 + $0xa8] sm:$0xff]  }
   0x5   :  { %628 = vmatpush3.bf16.msra.mxu1 %v675_v3  ;;  %v684_v12 = vld [vmem:[%s932_s1 + $0x60] sm:$0xff]   ;;  %v688_v16 = vld [vmem:[%s932_s1 + $0x58] sm:$0xff]   ;;  %v692_v20 = vld [vmem:[%s932_s1 + $0x50] sm:$0xff]  }
   0x6   :  { %629 = vmatprep.subr.bf16.mxu1 %v678_v6  ;;  %v685_v13 = vld [vmem:[%s932_s1 + $0x20] sm:$0xff]   ;;  %v689_v17 = vld [vmem:[%s932_s1 + $0x18] sm:$0xff]   ;;  %v693_v21 = vld [vmem:[%s932_s1 + $0x10] sm:$0xff]  }
   0x7   :  { %608 = vmatpush3.bf16.msra.mxu0 %v677_v5  ;;  %v686_v14 = vld [vmem:[%s932_s1 + $0xe0] sm:$0xff]   ;;  %v690_v18 = vld [vmem:[%s932_s1 + $0xd8] sm:$0xff]   ;;  %v694_v22 = vld [vmem:[%s932_s1 + $0xd0] sm:$0xff]  }
   0x8   :  { %609 = vmatprep.subr.bf16.mxu0 %v680_v8  ;;  %v687_v15 = vld [vmem:[%s932_s1 + $0xa0] sm:$0xff]   ;;  %v691_v19 = vld [vmem:[%s932_s1 + $0x98] sm:$0xff]   ;;  %v695_v23 = vld [vmem:[%s932_s1 + $0x90] sm:$0xff]  }
   0x9   :  { %630 = vmatpush3.bf16.msra.mxu1 %v679_v7  ;;  %v696_v24 = vld [vmem:[%s932_s1 + $0x48] sm:$0xff]   ;;  %v700_v28 = vld [vmem:[%s932_s1 + $0x40] sm:$0xff]   ;;  %v704_v36 = vld [vmem:[%s932_s1 + $0x178] sm:$0xff]  }
   0xa   :  { %631 = vmatprep.subr.bf16.mxu1 %v682_v10  ;;  %v697_v25 = vld [vmem:[%s932_s1 + $0x8] sm:$0xff]   ;;  %v701_v29 = vld [vmem:[%s932_s1] sm:$0xff]   ;;  %v19_v37 = vld [vmem:[%s931_s0 + $0x18] sm:$0xff] }
   0xb   :  { %610 = vmatpush3.bf16.msra.mxu0 %v681_v9  ;;  %v698_v26 = vld [vmem:[%s932_s1 + $0xc8] sm:$0xff]   ;;  %v702_v30 = vld [vmem:[%s932_s1 + $0xc0] sm:$0xff]   ;;  %v25_v38 = vpack.c.bf16 %v19_v37, %v19_v37  ;;  %v705_v39 = vld [vmem:[%s932_s1 + $0x138] sm:$0xff]  }
   0xc   :  { %611 = vmatprep.subr.bf16.mxu0 %v684_v12  ;;  %v699_v27 = vld [vmem:[%s932_s1 + $0x88] sm:$0xff]   ;;  %v703_v33 = vld [vmem:[%s932_s1 + $0x80] sm:$0xff]   ;;  %v18_v40 = vld [vmem:[%s931_s0 + $0x10] sm:$0xff] }
   0xd   :  { %632 = vmatpush3.bf16.msra.mxu1 %v683_v11  ;;  %v17_v31 = vld [vmem:[%s931_s0 + $0x8] sm:$0xff]  ;;  %v16_v34 = vld [vmem:[%s931_s0] sm:$0xff]  ;;  %491 = vmatprep.mubr.bf16.mxu1 %v25_v38  ;;  %v24_v41 = vpack.c.bf16 %v18_v40, %v18_v40  ;;  %v706_v42 = vld [vmem:[%s932_s1 + $0x170] sm:$0xff]  }
   0xe   :  { %633 = vmatprep.subr.bf16.mxu1 %v686_v14  ;;  %v23_v32 = vpack.c.bf16 %v17_v31, %v17_v31  ;;  %v22_v35 = vpack.c.bf16 %v16_v34, %v16_v34  ;;  %v707_v43 = vld [vmem:[%s932_s1 + $0x130] sm:$0xff]   ;;  %v708_v44 = vld [vmem:[%s932_s1 + $0x168] sm:$0xff]   ;;  %v710_v46 = vld [vmem:[%s932_s1 + $0x160] sm:$0xff]  }
   0xf   :  { %612 = vmatpush3.bf16.msra.mxu0 %v685_v13  ;;  %v709_v45 = vld [vmem:[%s932_s1 + $0x128] sm:$0xff]   ;;  %v711_v47 = vld [vmem:[%s932_s1 + $0x120] sm:$0xff]   ;;  %v712_v48 = vld [vmem:[%s932_s1 + $0x158] sm:$0xff]  }
  0x10   :  { %613 = vmatprep.subr.bf16.mxu0 %v688_v16  ;;  %451 = vmatprep.mubr.bf16.mxu0 %v23_v32  ;;  %v713_v49 = vld [vmem:[%s932_s1 + $0x118] sm:$0xff]   ;;  %v714_v50 = vld [vmem:[%s932_s1 + $0x150] sm:$0xff]   ;;  %v21_v51 = vld [vmem:[%s931_s0 + $0x28] sm:$0xff] }
  0x11   :  { %634 = vmatpush3.bf16.msra.mxu1 %v687_v15  ;;  %v27_v52 = vpack.c.bf16 %v21_v51, %v21_v51 }
  0x12   :  { %635 = vmatprep.subr.bf16.mxu1 %v690_v18 }
  0x13   :  { %614 = vmatpush3.bf16.msra.mxu0 %v689_v17 }
  0x14   :  { %615 = vmatprep.subr.bf16.mxu0 %v692_v20 }
  0x15   :  { %636 = vmatpush3.bf16.msra.mxu1 %v691_v19 }
  0x16   :  { %637 = vmatprep.subr.bf16.mxu1 %v694_v22 }
  0x17   :  { %616 = vmatpush3.bf16.msra.mxu0 %v693_v21 }
  0x18   :  { %617 = vmatprep.subr.bf16.mxu0 %v696_v24 }
  0x19   :  { %638 = vmatpush3.bf16.msra.mxu1 %v695_v23 }
  0x1a   :  { %639 = vmatprep.subr.bf16.mxu1 %v698_v26 }
  0x1b   :  { %618 = vmatpush3.bf16.msra.mxu0 %v697_v25 }
  0x1c   :  { %619 = vmatprep.subr.bf16.mxu0 %v700_v28 }
  0x1d   :  { %640 = vmatpush3.bf16.msra.mxu1 %v699_v27 }
  0x1e   :  { %641 = vmatprep.subr.bf16.mxu1 %v702_v30 }
  0x1f   :  { %620 = vmatpush3.bf16.msra.mxu0 %v701_v29 }
  0x20   :  { %649 = vmatprep.subr.bf16.mxu0 %v704_v36 }
  0x21   :  { %642 = vmatpush3.bf16.msra.mxu1 %v703_v33 }
  0x22   :  { %452 = vmatmul.mubr.bf16.vlgmr.msra.gmra.mxu0 %v22_v35 }
  0x23   :  { %650 = vmatpush3.bf16.msra.mxu0 %v705_v39 }
  0x24   :  { %492 = vmatmul.mubr.bf16.vlgmr.msra.gmra.mxu1 %v24_v41  ;;  %651 = vmatprep.subr.bf16.mxu0 %v706_v42 }
  0x27   :  { %652 = vmatpush3.bf16.msra.mxu0 %v707_v43 }
  0x28   :  { %653 = vmatprep.subr.bf16.mxu0 %v708_v44 }
  0x2b   :  { %654 = vmatpush3.bf16.msra.mxu0 %v709_v45 }
  0x2c   :  { %655 = vmatprep.subr.bf16.mxu0 %v710_v46 }
  0x2f   :  { %656 = vmatpush3.bf16.msra.mxu0 %v711_v47 }
  0x30   :  { %657 = vmatprep.subr.bf16.mxu0 %v712_v48 }
  0x31   :  { %8 = vsyncpa [#allocation3], 0  ;;  %v715_v53 = vld [vmem:[%s932_s1 + $0x110] sm:$0xff]   ;;  %531 = vmatprep.mubr.bf16.mxu0 %v27_v52  ;;  %v716_v54 = vld [vmem:[%s932_s1 + $0x148] sm:$0xff]   ;;  %vm540_vm0 = vcmask 257024  }
  0x32   :  { %v717_v55 = vld [vmem:[%s932_s1 + $0x108] sm:$0xff]   ;;  %v718_v56 = vld [vmem:[%s932_s1 + $0x140] sm:$0xff]  }
  0x33   :  { %658 = vmatpush3.bf16.msra.mxu0 %v713_v49  ;;  %v719_v57 = vld [vmem:[%s932_s1 + $0x100] sm:$0xff]  }
  0x34   :  { %659 = vmatprep.subr.bf16.mxu0 %v714_v50  ;;  %v20_v58 = vld [vmem:[%s931_s0 + $0x20] sm:$0xff]  ;;  %s742_s0 = smov [#allocation2]  }
  0x35   :  { %v26_v59 = vpack.c.bf16 %v20_v58, %v20_v58  ;;  %v556_v5 = vld [vmem:[%s933_s2] ss:$0 sm:$0xff]  ;;  %s548_s1 = sshll.u32 %s742_s0, 4  ;;  %s549_s1 = int_to_ptr.vmem [resolvable:$true] %s548_s1 }
  0x36   :  { %s720_s14 = scalar_lea.vmem %s549_s1, 64  ;;  %p725_p1 = scmp.lt.s32.totalorder %s549_s1, %s549_s1 }
  0x37   :  { %660 = vmatpush3.bf16.msra.mxu0 %v715_v53  ;;  %p721_p0 = scmp.ne.s32.totalorder %s549_s1, %s720_s14  ;;  %p726_p2 = scmp.lt.s32.totalorder %s720_s14, %s720_s14 }
  0x38   :  { %661 = vmatprep.subr.bf16.mxu0 %v716_v54 }
  0x39   :  { %p727_p3 = por %p726_p2, %p725_p1 }
  0x3b   :  { %662 = vmatpush3.bf16.msra.mxu0 %v717_v55  ;;  %p728_p4 = pnand %p727_p3, %p721_p0 }
  0x3c   :  { %663 = vmatprep.subr.bf16.mxu0 %v718_v56 }
  0x3f   :  { %664 = vmatpush3.bf16.msra.mxu0 %v719_v57 }
  0x42   :  { %532 = vmatmul.mubr.bf16.vlgmr.msra.gmra.mxu0 %v26_v59 }
  0xe2   :  { %v621_v60 = vpop.f32.mrf.mxu0 }
  0xe4   :  { %v622_v61 = vpop.f32.mrf.mxu0  ;;  %v643_v62 = vpop.f32.mrf.mxu1 }
  0xe5   :  { %v623_v4 = vadd.f32 %v622_v61, %v621_v60 }
  0xe6   :  { %v624_v63 = vpop.f32.mrf.mxu0  ;;  %v644_v0 = vpop.f32.mrf.mxu1 }
  0xe7   :  { %v454_v6 = vadd.f32 %v623_v4, %v556_v5  ;;  %v645_v7 = vadd.f32 %v644_v0, %v643_v62 }
  0xe8   :  { %v625_v1 = vpop.f32.mrf.mxu0  ;;  %v646_v2 = vpop.f32.mrf.mxu1 }
  0xe9   :  { %v494_v10 = vadd.f32 %v645_v7, %v454_v6 }
  0xea   :  { %v647_v3 = vpop.f32.mrf.mxu1 }
 0x102   :  { %v665_v8 = vpop.f32.mrf.mxu0 }
 0x104   :  { %v666_v9 = vpop.f32.mrf.mxu0 }
 0x105   :  { %v667_v11 = vadd.f32 %v666_v9, %v665_v8 }
 0x106   :  { %v668_v12 = vpop.f32.mrf.mxu0 }
 0x107   :  { %v534_v13 = vadd.f32 %v667_v11, %v494_v10 }
 0x108   :  { %v669_v14 = vpop.f32.mrf.mxu0 }
 0x109   :  { %v539_v15 = vpack.c.bf16 %v534_v13, %v534_v13 }
 0x10b   :  { %541 = vst.msk [vmem:[#allocation2] sm:$0xf] %vm540_vm0, %v539_v15 }
 0x10c   :  { %731 = shalt.err (!%p728_p4)
}
 0x10d   :  { %551 = dma.vmem_to_hbm [thread:$0]  %s549_s1, 64, %s934_s3, [#allocation3]  }
 0x10e   :  { %740 = dma.done.wait [#allocation3], 64  }
 0x10f   :  { %741 = vsyncadd [#allocation3], 4294967232 }
 0x110   :  { %555 = vsyncpa [#allocation3], 1 }

</bundles_post_ra>
